<compile_context>
chip_gen: v6e
topology: v6e:2x2x1
jax: 0.10.0
libtpu: 0.0.40
codegen_flags: <defaults>
</compile_context>

<pallas_src>
import functools

import jax
import jax.numpy as jnp
import numpy as np
from jax.experimental import pallas as pl
from jax.experimental.pallas import tpu as pltpu


def _sab_kernel(w_ref, b_ref, x_ref, o_ref, *, H, W):
    # w_ref: SMEM (18,) f32  -- conv weight flattened as [in_ch, kh, kw]
    # b_ref: SMEM (1,)  f32  -- conv bias
    # x_ref: VMEM (Nb, C, HW)
    # o_ref: VMEM (Nb, 1, HW)
    Nb, C, HW = x_ref.shape

    # ---- fused channel mean / max: single pass over C --------------------
    x0 = x_ref[:, 0, :].astype(jnp.float32)            # (Nb, HW)
    csum = x0
    cmax = x0
    for c in range(1, C):
        xc = x_ref[:, c, :].astype(jnp.float32)
        csum = csum + xc
        cmax = jnp.maximum(cmax, xc)
    feats = (csum * (1.0 / C), cmax)                   # (avg, max)

    # ---- shared edge masks on the flattened spatial index ----------------
    idx = jax.lax.broadcasted_iota(jnp.int32, (1, HW), 1)
    col = idx % W
    col_ok = {-1: col >= 1, 1: col <= W - 2}           # f[i, j+dj] in-bounds
    row_ok = {-1: idx >= W, 1: idx < (H - 1) * W}      # f[i+di, j] in-bounds

    def col_shift(f, dj):
        # value at flat index (i, j) becomes f[i, j + dj]; zero outside row.
        if dj == 0:
            return f
        return jnp.where(col_ok[dj], jnp.roll(f, shift=-dj, axis=1), 0.0)

    # ---- restructured 3x3 conv -------------------------------------------
    # hs[di+1][idx(i,j)] = sum_{c, dj} w[c, di+1, dj+1] * f_c[i, j + dj]
    hs = [None, None, None]
    for c in range(2):
        f = feats[c]
        for dj in (-1, 0, 1):
            fs = col_shift(f, dj)                      # reused across 3 di's
            for di in (-1, 0, 1):
                wc = w_ref[c * 9 + (di + 1) * 3 + (dj + 1)]
                t = wc * fs
                k = di + 1
                hs[k] = t if hs[k] is None else hs[k] + t

    # out[idx(i,j)] = b + sum_{di} hs[di+1][i + di, j]   (top/bottom masked)
    out = hs[1] + b_ref[0]
    for di in (-1, 1):
        g = jnp.roll(hs[di + 1], shift=-di * W, axis=1)
        out = out + jnp.where(row_ok[di], g, 0.0)

    o_ref[:, 0, :] = jax.nn.sigmoid(out).astype(o_ref.dtype)


def _choose_block_n(N, C, HW, itemsize, target_bytes=512 * 1024):
    """Largest divisor of N whose input block is near target_bytes, keeping
    >= 2 grid steps (for v7x's two TensorCores) whenever N >= 2."""
    per_img = max(1, C * HW * itemsize)
    nb = max(1, min(N, target_bytes // per_img))
    if N >= 2:
        nb = min(nb, max(1, N // 2))
    while N % nb:
        nb -= 1
    return nb


def spatial_attention_block(x, w, b):
    """x: (N, C, H, W); w: (1, 2, 3, 3); b: (1,)  ->  (N, 1, H, W) f32."""
    N, C, H, W = x.shape
    HW = H * W

    x_flat = x.reshape(N, C, HW)                       # lane-dense layout
    w_flat = w.reshape(-1).astype(jnp.float32)         # (18,) = [in_ch, kh, kw]
    b = b.astype(jnp.float32)

    nb = _choose_block_n(N, C, HW, x.dtype.itemsize)
    grid = (N // nb,)

    out = pl.pallas_call(
        functools.partial(_sab_kernel, H=H, W=W),
        out_shape=jax.ShapeDtypeStruct((N, 1, HW), jnp.float32),
        grid_spec=pltpu.PrefetchScalarGridSpec(
            num_scalar_prefetch=0,
            grid=grid,
            in_specs=[
                pl.BlockSpec(memory_space=pltpu.MemorySpace.SMEM),  # weights
                pl.BlockSpec(memory_space=pltpu.MemorySpace.SMEM),  # bias
                pl.BlockSpec((nb, C, HW), lambda n: (n, 0, 0)),     # x
            ],
            out_specs=pl.BlockSpec((nb, 1, HW), lambda n: (n, 0, 0)),
        ),
        compiler_params=pltpu.CompilerParams(
            dimension_semantics=("parallel",)),
    )(w_flat, b, x_flat)

    return out.reshape(N, 1, H, W)


def _reference(x, w, b):
    avg = jnp.mean(x, axis=1, keepdims=True)
    mx = jnp.max(x, axis=1, keepdims=True)
    inp = jnp.concatenate([avg, mx], axis=1)
    out = jax.lax.conv_general_dilated(
        inp, w, window_strides=(1, 1), padding="SAME",
        dimension_numbers=("NCHW", "OIHW", "NCHW"))
    return jax.nn.sigmoid(out + b.reshape(1, 1, 1, 1))


if __name__ == "__main__":
    key = jax.random.PRNGKey(0)
    kx, kw, kb = jax.random.split(key, 3)

    N, C, H, W = 2, 4, 16, 16
    x = jax.random.normal(kx, (N, C, H, W), dtype=jnp.float32)

    # Deterministic conv params, mimicking PyTorch default uniform(-k, k),
    # k = 1/sqrt(fan_in) with fan_in = 2 * 3 * 3.
    k = 1.0 / np.sqrt(2 * 3 * 3)
    w = jax.random.uniform(kw, (1, 2, 3, 3), minval=-k, maxval=k,
                           dtype=jnp.float32)
    b = jax.random.uniform(kb, (1,), minval=-k, maxval=k, dtype=jnp.float32)

    out = jax.block_until_ready(spatial_attention_block(x, w, b))
    ref = jax.block_until_ready(_reference(x, w, b))
    np.testing.assert_allclose(np.asarray(out), np.asarray(ref),
                               rtol=1e-5, atol=1e-5)
    print("KERNEL_OK")
</pallas_src>

<mosaic_0001>
module attributes {stable_mosaic.version = 11 : i64} {
  func.func @_sab_kernel(%arg0: i32, %arg1: memref<18xf32, #tpu.memory_space<smem>>, %arg2: memref<1xf32, #tpu.memory_space<smem>>, %arg3: memref<1x4x256xf32, #tpu.memory_space<vmem>>, %arg4: memref<1x1x256xf32, #tpu.memory_space<vmem>>) attributes {dimension_semantics = [#tpu.dimension_semantics<parallel>], iteration_bounds = array<i64: 2>, scalar_prefetch = 0 : i64, scratch_operands = 0 : i64, tpu.core_type = #tpu.core_type<tc>, window_params = [{transform_indices = @transform_0, window_bounds = array<i64: 18>}, {transform_indices = @transform_1, window_bounds = array<i64: 1>}, {transform_indices = @transform_2, window_bounds = array<i64: 1, 4, 256>}, {transform_indices = @transform_3, window_bounds = array<i64: 1, 1, 256>}]} {
    %c0 = arith.constant 0 : index
    %c0_0 = arith.constant 0 : index
    %c0_1 = arith.constant 0 : index
    %0 = vector.load %arg3[%c0, %c0_0, %c0_1] : memref<1x4x256xf32, #tpu.memory_space<vmem>>, vector<1x1x256xf32>
    %1 = vector.shape_cast %0 : vector<1x1x256xf32> to vector<1x256xf32>
    %c0_2 = arith.constant 0 : index
    %c1 = arith.constant 1 : index
    %c0_3 = arith.constant 0 : index
    %2 = vector.load %arg3[%c0_2, %c1, %c0_3] : memref<1x4x256xf32, #tpu.memory_space<vmem>>, vector<1x1x256xf32>
    %3 = vector.shape_cast %2 : vector<1x1x256xf32> to vector<1x256xf32>
    %4 = arith.addf %1, %3 : vector<1x256xf32>
    %5 = arith.maximumf %1, %3 : vector<1x256xf32>
    %c0_4 = arith.constant 0 : index
    %c2 = arith.constant 2 : index
    %c0_5 = arith.constant 0 : index
    %6 = vector.load %arg3[%c0_4, %c2, %c0_5] : memref<1x4x256xf32, #tpu.memory_space<vmem>>, vector<1x1x256xf32>
    %7 = vector.shape_cast %6 : vector<1x1x256xf32> to vector<1x256xf32>
    %8 = arith.addf %4, %7 : vector<1x256xf32>
    %9 = arith.maximumf %5, %7 : vector<1x256xf32>
    %c0_6 = arith.constant 0 : index
    %c3 = arith.constant 3 : index
    %c0_7 = arith.constant 0 : index
    %10 = vector.load %arg3[%c0_6, %c3, %c0_7] : memref<1x4x256xf32, #tpu.memory_space<vmem>>, vector<1x1x256xf32>
    %11 = vector.shape_cast %10 : vector<1x1x256xf32> to vector<1x256xf32>
    %12 = arith.addf %8, %11 : vector<1x256xf32>
    %13 = arith.maximumf %9, %11 : vector<1x256xf32>
    %cst = arith.constant 2.500000e-01 : f32
    %14 = vector.broadcast %cst : f32 to vector<1x256xf32>
    %15 = arith.mulf %12, %14 : vector<1x256xf32>
    %16 = tpu.iota {dimensions = array<i32: 1>} : vector<1x256xi32>
    %c16_i32 = arith.constant 16 : i32
    %c0_i32 = arith.constant 0 : i32
    %17 = arith.cmpi eq, %c16_i32, %c0_i32 : i32
    %c1_i32 = arith.constant 1 : i32
    %18 = arith.select %17, %c1_i32, %c16_i32 : i32
    %19 = vector.broadcast %18 : i32 to vector<1x256xi32>
    %20 = arith.remsi %16, %19 : vector<1x256xi32>
    %c0_i32_8 = arith.constant 0 : i32
    %21 = vector.broadcast %c0_i32_8 : i32 to vector<1x256xi32>
    %22 = arith.cmpi ne, %20, %21 : vector<1x256xi32>
    %c0_i32_9 = arith.constant 0 : i32
    %23 = vector.broadcast %c0_i32_9 : i32 to vector<1x256xi32>
    %24 = arith.cmpi slt, %20, %23 : vector<1x256xi32>
    %c0_i32_10 = arith.constant 0 : i32
    %25 = arith.cmpi slt, %18, %c0_i32_10 : i32
    %26 = vector.broadcast %25 : i1 to vector<1x256xi1>
    %27 = vector.broadcast %26 : vector<1x256xi1> to vector<1x256xi1>
    %28 = arith.xori %24, %27 : vector<1x256xi1>
    %29 = arith.andi %28, %22 : vector<1x256xi1>
    %30 = vector.broadcast %18 : i32 to vector<1x256xi32>
    %31 = arith.addi %20, %30 : vector<1x256xi32>
    %32 = arith.select %29, %31, %20 : vector<1x256xi1>, vector<1x256xi32>
    %c1_i32_11 = arith.constant 1 : i32
    %33 = vector.broadcast %c1_i32_11 : i32 to vector<1x256xi32>
    %34 = arith.cmpi sge, %32, %33 : vector<1x256xi32>
    %c14_i32 = arith.constant 14 : i32
    %35 = vector.broadcast %c14_i32 : i32 to vector<1x256xi32>
    %36 = arith.cmpi sle, %32, %35 : vector<1x256xi32>
    %c16_i32_12 = arith.constant 16 : i32
    %37 = vector.broadcast %c16_i32_12 : i32 to vector<1x256xi32>
    %38 = arith.cmpi sge, %16, %37 : vector<1x256xi32>
    %c240_i32 = arith.constant 240 : i32
    %39 = vector.broadcast %c240_i32 : i32 to vector<1x256xi32>
    %40 = arith.cmpi slt, %16, %39 : vector<1x256xi32>
    %41 = vector.extract_strided_slice %15 {offsets = [0, 255], sizes = [1, 1], strides = [1, 1]} : vector<1x256xf32> to vector<1x1xf32>
    %42 = vector.extract_strided_slice %15 {offsets = [0, 0], sizes = [1, 255], strides = [1, 1]} : vector<1x256xf32> to vector<1x255xf32>
    %43 = tpu.concatenate %41, %42 in 1 : vector<1x1xf32>, vector<1x255xf32> -> vector<1x256xf32>
    %cst_13 = arith.constant 0.000000e+00 : f32
    %44 = vector.broadcast %cst_13 : f32 to vector<1x256xf32>
    %45 = arith.select %34, %43, %44 : vector<1x256xi1>, vector<1x256xf32>
    %c0_14 = arith.constant 0 : index
    %46 = memref.load %arg1[%c0_14] : memref<18xf32, #tpu.memory_space<smem>>
    %47 = vector.broadcast %46 : f32 to vector<1x256xf32>
    %48 = arith.mulf %47, %45 : vector<1x256xf32>
    %c3_15 = arith.constant 3 : index
    %49 = memref.load %arg1[%c3_15] : memref<18xf32, #tpu.memory_space<smem>>
    %50 = vector.broadcast %49 : f32 to vector<1x256xf32>
    %51 = arith.mulf %50, %45 : vector<1x256xf32>
    %c6 = arith.constant 6 : index
    %52 = memref.load %arg1[%c6] : memref<18xf32, #tpu.memory_space<smem>>
    %53 = vector.broadcast %52 : f32 to vector<1x256xf32>
    %54 = arith.mulf %53, %45 : vector<1x256xf32>
    %c1_16 = arith.constant 1 : index
    %55 = memref.load %arg1[%c1_16] : memref<18xf32, #tpu.memory_space<smem>>
    %56 = vector.broadcast %55 : f32 to vector<1x256xf32>
    %57 = arith.mulf %56, %15 : vector<1x256xf32>
    %58 = arith.addf %48, %57 : vector<1x256xf32>
    %c4 = arith.constant 4 : index
    %59 = memref.load %arg1[%c4] : memref<18xf32, #tpu.memory_space<smem>>
    %60 = vector.broadcast %59 : f32 to vector<1x256xf32>
    %61 = arith.mulf %60, %15 : vector<1x256xf32>
    %62 = arith.addf %51, %61 : vector<1x256xf32>
    %c7 = arith.constant 7 : index
    %63 = memref.load %arg1[%c7] : memref<18xf32, #tpu.memory_space<smem>>
    %64 = vector.broadcast %63 : f32 to vector<1x256xf32>
    %65 = arith.mulf %64, %15 : vector<1x256xf32>
    %66 = arith.addf %54, %65 : vector<1x256xf32>
    %67 = vector.extract_strided_slice %15 {offsets = [0, 1], sizes = [1, 255], strides = [1, 1]} : vector<1x256xf32> to vector<1x255xf32>
    %68 = vector.extract_strided_slice %15 {offsets = [0, 0], sizes = [1, 1], strides = [1, 1]} : vector<1x256xf32> to vector<1x1xf32>
    %69 = tpu.concatenate %67, %68 in 1 : vector<1x255xf32>, vector<1x1xf32> -> vector<1x256xf32>
    %cst_17 = arith.constant 0.000000e+00 : f32
    %70 = vector.broadcast %cst_17 : f32 to vector<1x256xf32>
    %71 = arith.select %36, %69, %70 : vector<1x256xi1>, vector<1x256xf32>
    %c2_18 = arith.constant 2 : index
    %72 = memref.load %arg1[%c2_18] : memref<18xf32, #tpu.memory_space<smem>>
    %73 = vector.broadcast %72 : f32 to vector<1x256xf32>
    %74 = arith.mulf %73, %71 : vector<1x256xf32>
    %75 = arith.addf %58, %74 : vector<1x256xf32>
    %c5 = arith.constant 5 : index
    %76 = memref.load %arg1[%c5] : memref<18xf32, #tpu.memory_space<smem>>
    %77 = vector.broadcast %76 : f32 to vector<1x256xf32>
    %78 = arith.mulf %77, %71 : vector<1x256xf32>
    %79 = arith.addf %62, %78 : vector<1x256xf32>
    %c8 = arith.constant 8 : index
    %80 = memref.load %arg1[%c8] : memref<18xf32, #tpu.memory_space<smem>>
    %81 = vector.broadcast %80 : f32 to vector<1x256xf32>
    %82 = arith.mulf %81, %71 : vector<1x256xf32>
    %83 = arith.addf %66, %82 : vector<1x256xf32>
    %84 = vector.extract_strided_slice %13 {offsets = [0, 255], sizes = [1, 1], strides = [1, 1]} : vector<1x256xf32> to vector<1x1xf32>
    %85 = vector.extract_strided_slice %13 {offsets = [0, 0], sizes = [1, 255], strides = [1, 1]} : vector<1x256xf32> to vector<1x255xf32>
    %86 = tpu.concatenate %84, %85 in 1 : vector<1x1xf32>, vector<1x255xf32> -> vector<1x256xf32>
    %cst_19 = arith.constant 0.000000e+00 : f32
    %87 = vector.broadcast %cst_19 : f32 to vector<1x256xf32>
    %88 = arith.select %34, %86, %87 : vector<1x256xi1>, vector<1x256xf32>
    %c9 = arith.constant 9 : index
    %89 = memref.load %arg1[%c9] : memref<18xf32, #tpu.memory_space<smem>>
    %90 = vector.broadcast %89 : f32 to vector<1x256xf32>
    %91 = arith.mulf %90, %88 : vector<1x256xf32>
    %92 = arith.addf %75, %91 : vector<1x256xf32>
    %c12 = arith.constant 12 : index
    %93 = memref.load %arg1[%c12] : memref<18xf32, #tpu.memory_space<smem>>
    %94 = vector.broadcast %93 : f32 to vector<1x256xf32>
    %95 = arith.mulf %94, %88 : vector<1x256xf32>
    %96 = arith.addf %79, %95 : vector<1x256xf32>
    %c15 = arith.constant 15 : index
    %97 = memref.load %arg1[%c15] : memref<18xf32, #tpu.memory_space<smem>>
    %98 = vector.broadcast %97 : f32 to vector<1x256xf32>
    %99 = arith.mulf %98, %88 : vector<1x256xf32>
    %100 = arith.addf %83, %99 : vector<1x256xf32>
    %c10 = arith.constant 10 : index
    %101 = memref.load %arg1[%c10] : memref<18xf32, #tpu.memory_space<smem>>
    %102 = vector.broadcast %101 : f32 to vector<1x256xf32>
    %103 = arith.mulf %102, %13 : vector<1x256xf32>
    %104 = arith.addf %92, %103 : vector<1x256xf32>
    %c13 = arith.constant 13 : index
    %105 = memref.load %arg1[%c13] : memref<18xf32, #tpu.memory_space<smem>>
    %106 = vector.broadcast %105 : f32 to vector<1x256xf32>
    %107 = arith.mulf %106, %13 : vector<1x256xf32>
    %108 = arith.addf %96, %107 : vector<1x256xf32>
    %c16 = arith.constant 16 : index
    %109 = memref.load %arg1[%c16] : memref<18xf32, #tpu.memory_space<smem>>
    %110 = vector.broadcast %109 : f32 to vector<1x256xf32>
    %111 = arith.mulf %110, %13 : vector<1x256xf32>
    %112 = arith.addf %100, %111 : vector<1x256xf32>
    %113 = vector.extract_strided_slice %13 {offsets = [0, 1], sizes = [1, 255], strides = [1, 1]} : vector<1x256xf32> to vector<1x255xf32>
    %114 = vector.extract_strided_slice %13 {offsets = [0, 0], sizes = [1, 1], strides = [1, 1]} : vector<1x256xf32> to vector<1x1xf32>
    %115 = tpu.concatenate %113, %114 in 1 : vector<1x255xf32>, vector<1x1xf32> -> vector<1x256xf32>
    %cst_20 = arith.constant 0.000000e+00 : f32
    %116 = vector.broadcast %cst_20 : f32 to vector<1x256xf32>
    %117 = arith.select %36, %115, %116 : vector<1x256xi1>, vector<1x256xf32>
    %c11 = arith.constant 11 : index
    %118 = memref.load %arg1[%c11] : memref<18xf32, #tpu.memory_space<smem>>
    %119 = vector.broadcast %118 : f32 to vector<1x256xf32>
    %120 = arith.mulf %119, %117 : vector<1x256xf32>
    %121 = arith.addf %104, %120 : vector<1x256xf32>
    %c14 = arith.constant 14 : index
    %122 = memref.load %arg1[%c14] : memref<18xf32, #tpu.memory_space<smem>>
    %123 = vector.broadcast %122 : f32 to vector<1x256xf32>
    %124 = arith.mulf %123, %117 : vector<1x256xf32>
    %125 = arith.addf %108, %124 : vector<1x256xf32>
    %c17 = arith.constant 17 : index
    %126 = memref.load %arg1[%c17] : memref<18xf32, #tpu.memory_space<smem>>
    %127 = vector.broadcast %126 : f32 to vector<1x256xf32>
    %128 = arith.mulf %127, %117 : vector<1x256xf32>
    %129 = arith.addf %112, %128 : vector<1x256xf32>
    %c0_21 = arith.constant 0 : index
    %130 = memref.load %arg2[%c0_21] : memref<1xf32, #tpu.memory_space<smem>>
    %131 = vector.broadcast %130 : f32 to vector<1x256xf32>
    %132 = arith.addf %125, %131 : vector<1x256xf32>
    %133 = vector.extract_strided_slice %121 {offsets = [0, 240], sizes = [1, 16], strides = [1, 1]} : vector<1x256xf32> to vector<1x16xf32>
    %134 = vector.extract_strided_slice %121 {offsets = [0, 0], sizes = [1, 240], strides = [1, 1]} : vector<1x256xf32> to vector<1x240xf32>
    %135 = tpu.concatenate %133, %134 in 1 : vector<1x16xf32>, vector<1x240xf32> -> vector<1x256xf32>
    %cst_22 = arith.constant 0.000000e+00 : f32
    %136 = vector.broadcast %cst_22 : f32 to vector<1x256xf32>
    %137 = arith.select %38, %135, %136 : vector<1x256xi1>, vector<1x256xf32>
    %138 = arith.addf %132, %137 : vector<1x256xf32>
    %139 = vector.extract_strided_slice %129 {offsets = [0, 16], sizes = [1, 240], strides = [1, 1]} : vector<1x256xf32> to vector<1x240xf32>
    %140 = vector.extract_strided_slice %129 {offsets = [0, 0], sizes = [1, 16], strides = [1, 1]} : vector<1x256xf32> to vector<1x16xf32>
    %141 = tpu.concatenate %139, %140 in 1 : vector<1x240xf32>, vector<1x16xf32> -> vector<1x256xf32>
    %cst_23 = arith.constant 0.000000e+00 : f32
    %142 = vector.broadcast %cst_23 : f32 to vector<1x256xf32>
    %143 = arith.select %40, %141, %142 : vector<1x256xi1>, vector<1x256xf32>
    %144 = arith.addf %138, %143 : vector<1x256xf32>
    %145 = arith.negf %144 : vector<1x256xf32>
    %146 = math.exp %145 : vector<1x256xf32>
    %cst_24 = arith.constant 1.000000e+00 : f32
    %147 = vector.broadcast %cst_24 : f32 to vector<1x256xf32>
    %148 = arith.addf %147, %146 : vector<1x256xf32>
    %149 = arith.divf %147, %148 : vector<1x256xf32>
    %c0_25 = arith.constant 0 : index
    %c0_26 = arith.constant 0 : index
    %c0_27 = arith.constant 0 : index
    %150 = vector.load %arg4[%c0_25, %c0_26, %c0_27] : memref<1x1x256xf32, #tpu.memory_space<vmem>>, vector<1x1x256xf32>
    %151 = vector.shape_cast %150 : vector<1x1x256xf32> to vector<1x256xf32>
    %152 = vector.shape_cast %149 : vector<1x256xf32> to vector<1x1x256xf32>
    tpu.vector_store %arg4[%c0_25, %c0_26, %c0_27], %152 {strides = array<i32>} : memref<1x1x256xf32, #tpu.memory_space<vmem>>, vector<1x1x256xf32>,
    return
  }
  func.func @transform_0(%arg0: i32) -> i32 {
    %c0_i32 = arith.constant 0 : i32
    %c0_i32_0 = arith.constant 0 : i32
    return %c0_i32 : i32
  }
  func.func @transform_1(%arg0: i32) -> i32 {
    %c0_i32 = arith.constant 0 : i32
    %c0_i32_0 = arith.constant 0 : i32
    return %c0_i32 : i32
  }
  func.func @transform_2(%arg0: i32) -> (i32, i32, i32) {
    %c0_i32 = arith.constant 0 : i32
    %c0_i32_0 = arith.constant 0 : i32
    %c0_i32_1 = arith.constant 0 : i32
    return %arg0, %c0_i32, %c0_i32_0 : i32, i32, i32
  }
  func.func @transform_3(%arg0: i32) -> (i32, i32, i32) {
    %c0_i32 = arith.constant 0 : i32
    %c0_i32_0 = arith.constant 0 : i32
    %c0_i32_1 = arith.constant 0 : i32
    return %arg0, %c0_i32, %c0_i32_0 : i32, i32, i32
  }
}

</mosaic_0001>

<bundles_post_ra>
// kernel: tpu_custom_call.1
= control target key start
LH: loop header
LB: loop body
LE: loop exit
PB: predicated region body
PF: predicated region fallthrough
CT: control target
= control target key end

     0   :  { %s1243_s0 = inlined_call_operand.vmem [shape: f32[18], index: 0, kind: input, shape index: {}]   ;;  %s1244_s1 = inlined_call_operand.<no memory space> [shape: f32[1], index: 1, kind: input, shape index: {}]   ;;  %s1245_s2 = inlined_call_operand.hbm [shape: f32[2,4,256], index: 2, kind: input, shape index: {}]   ;;  %s1246_s3 = inlined_call_operand.hbm [shape: f32[2,1,256], index: 3, kind: output, shape index: {}]  }
   0x1   :  { %8 = sst [smem:[#allocation2]] %s1244_s1 }
   0x2   :  { %9 = vsyncpa [#allocation6], 0 }
   0x3   :  { %10 = vsyncpa [#allocation4], 0 }
   0x4   :  { %12 = vsyncpa [#allocation4 + $0x1], 0 }
   0x5   :  { %13 = vsyncpa [#allocation5], 0 }
   0x6   :  { %15 = vsyncpa [#allocation5 + $0x1], 0  ;;  %s899_s14 = smov 0   ;;  %s901_s15 = smov 0  }
   0x7   :  { %s903_s16 = smov 0   ;;  %s905_s17 = smov 0  }
   0x8 LB: > { %s920_s1 = sadd.s32 4294967295, %s866_s17   ;;  %s645_s18 = sadd.s32 4294967294, %s866_s17   ;;  %s866_s17 = sphi %s905_s17, %s1277_s17   ;;  %s862_s16 = sphi %s903_s16, %s1276_s16   ;;  %s858_s15 = sphi %s901_s15, %s1275_s15   ;;  %s854_s14 = sphi %s899_s14, %s1274_s14  }
   0x9   : > { %p83_p0 = scmp.ne.s32.totalorder %s858_s15, %s854_s14  ;;  %p1247_p1 = scmp.eq.s32.totalorder %s920_s1, 0 }
   0xa   : > { %p113_p3 = scmp.eq.s32.totalorder %s645_s18, 1  ;;  %p646_p5 = scmp.ge.s32.totalorder %s866_s17, 1 }
   0xb   : > { %p929_p4 = por %p1247_p1, %p83_p0  ;;  %p120_p7 = scmp.lt.s32.totalorder %s866_s17, 3 }
   0xc   : > { %p934_p6 = por %p113_p3, %p83_p0  ;;  %s133_s23 = sshll.u32 %s1243_s0, 4  ;;  %s134_s23 = int_to_ptr.vmem [resolvable:$true] %s133_s23 }
   0xd   : > { %s1251_s19 = scalar_select %p929_p4, 1, 0 }
   0xe   : > { %s1252_s20 = scalar_select %p934_p6, 1, 0 }
   0xf   : > { %p942_p8 = pnand %p646_p5, %p120_p7  ;;  %s950_s25 = sadd.s32 1, %s866_s17  }
  0x10   : > { %s67_s27 = ssub.s32 %s866_s17, %s950_s25  ;;  %s70_s29 = sadd.s32 1, %s862_s16 }
  0x11   : > { %s1253_s24 = scalar_select %p942_p8, 1, 0 }
  0x12   : > { %p693_p10 = pneg %p942_p8  ;;  %p960_p12 = scmp.eq.s32.totalorder %s67_s27, 0 }
  0x13   : > { %p77_p13 = scmp.ne.s32.totalorder %s862_s16, %s858_s15  ;;  %s755_s30 = scalar_lea.vmem %s134_s23, 16 }
  0x14   : > { %p954_p11 = pnand %p693_p10, %p1247_p1  ;;  %p756_p0 = scmp.ne.s32.totalorder %s134_s23, %s755_s30 }
  0x15   : > { %p763_p9 = scmp.lt.s32.totalorder %s134_s23, %s134_s23  ;;  %p764_p2 = scmp.lt.s32.totalorder %s755_s30, %s755_s30 }
  0x16   : > { %p757_p3 = pneg %p954_p11 }
  0x17   : > { %p765_p10 = por %p764_p2, %p763_p9 }
  0x18   : > { %p758_p5 = pnand %p757_p3, %p756_p0 }
  0x1a   : > { %p759_p7 = pneg %p758_p5 }
  0x1c   : > { %p766_p1 = pnand %p765_p10, %p759_p7 }
  0x1e   : > { %769 = shalt.err (!%p766_p1)
}
  0x1f   : > { %s868_s4 = smov [#allocation3]   ;;  %p78_p2 = scmp.eq.s32.totalorder %s866_s17, 0 }
  0x20   : > { %696 = dma.vmem_to_smem (!%p954_p11), %s134_s23, 16, %s868_s4, [#allocation6]  }
  0x21   : > { %s974_s5 = scalar_select %p960_p12, %s862_s16, %s70_s29  }
  0x22   : > { %p1256_p1 = scmp.eq.s32.totalorder %s920_s1, 1  ;;  %p706_p0 = scmp.lt.s32.totalorder %s866_s17, 2 }
  0x23   : > { %s147_s7 = sand.u32 1, %s862_s16   ;;  %p79_p3 = por %p78_p2, %p77_p13 }
  0x24   : > { %p982_p9 = por %p1256_p1, %p77_p13  ;;  %s649_s8 = sshll.u32 %s147_s7, 3 }
  0x25   : > { %s683_s9 = sshll.u32 %s866_s17, 7  ;;  %s151_s13 = scalar_lea.vmem [#allocation7], %s649_s8 }
  0x26   : > { %s1257_s6 = scalar_select %p982_p9, 1, 0 }
  0x27   : > { %s995_s12 = scalar_lea.hbm %s1245_s2, %s683_s9  ;;  %s159_s18 = sshll.u32 %s151_s13, 4  ;;  %s160_s18 = int_to_ptr.vmem [resolvable:$true] %s159_s18 }
  0x28   : > { %p997_p11 = pnand %p706_p0, %p79_p3  ;;  %s148_s22 = scalar_lea.sflag [#allocation4], %s147_s7 }
  0x29   : > { %s770_s23 = scalar_lea.hbm %s995_s12, 128  ;;  %s775_s28 = scalar_lea.hbm %s1245_s2, 256 }
  0x2a   : > { %p771_p12 = scmp.ne.s32.totalorder %s995_s12, %s770_s23  ;;  %p772_p13 = pneg %p997_p11 }
  0x2b   : > { %p776_p10 = scmp.lt.s32.totalorder %s995_s12, %s1245_s2  ;;  %p777_p2 = scmp.lt.s32.totalorder %s775_s28, %s770_s23 }
  0x2c   : > { %p773_p5 = pnand %p772_p13, %p771_p12 }
  0x2d   : > { %p778_p1 = por %p777_p2, %p776_p10 }
  0x2e   : > { %p774_p7 = pneg %p773_p5 }
  0x30   : > { %p779_p0 = pnand %p778_p1, %p774_p7 }
  0x32   : > { %782 = shalt.err (!%p779_p0)
}
  0x33   : > { %s783_s4 = scalar_lea.vmem %s160_s18, 128  ;;  %s869_s7 = smov [#allocation7]  }
  0x34   : > { %p784_p3 = scmp.ne.s32.totalorder %s160_s18, %s783_s4  ;;  %s788_s8 = sshll.u32 %s869_s7, 4  ;;  %s789_s8 = int_to_ptr.vmem [resolvable:$false] %s788_s8 }
  0x35   : > { %s790_s9 = scalar_lea.vmem %s789_s8, 256  ;;  %p791_p12 = scmp.lt.s32.totalorder %s160_s18, %s789_s8 }
  0x36   : > { %p786_p6 = pnand %p784_p3, %p772_p13  ;;  %p792_p5 = scmp.lt.s32.totalorder %s790_s9, %s783_s4 }
  0x38   : > { %p787_p9 = pneg %p786_p6  ;;  %p793_p4 = por %p792_p5, %p791_p12 }
  0x3a   : > { %p794_p8 = pnand %p793_p4, %p787_p9 }
  0x3c   : > { %797 = shalt.err (!%p794_p8)
}
  0x3d   : > { %700 = dma.hbm_to_vmem [thread:$0]  (!%p997_p11), %s995_s12, 128, %s160_s18, %s148_s22  }
  0x3e   : > { %p1259_p7 = scmp.ne.s32.totalorder %s1253_s24, 0 }
  0x3f   : > { %p1260_p10 = scmp.eq.s32.totalorder (!%p1259_p7), %s920_s1, 0 }
  0x40   : > { %168 = sbr.rel (%p1259_p7) target bundleno = 398 (0x18e), region = 32 }
  0x45   : > { %841 = dma.done.wait (%p1260_p10), [#allocation6], 16   ;;  %p1261_p6 = pmov %p1260_p10 }
  0x46   : > { %s1022_s10 = sand.u32 1, %s858_s15   ;;  %p1262_p4 = scmp.ne.s32.totalorder %s1251_s19, 0 }
  0x47   : > { %843 = vsyncadd (%p1261_p6), [#allocation6], 4294967280  ;;  %s654_s11 = sshll.u32 %s1022_s10, 3  ;;  %s175_s13 = scalar_lea.sflag [#allocation4], %s1022_s10 }
  0x48   : > { %s178_s21 = scalar_lea.vmem [#allocation7], %s654_s11 }
  0x49   : > { %845 = dma.done.wait (%p1262_p4), %s175_s13, 128  }
  0x4a   : > { %847 = vsyncadd (%p1262_p4), %s175_s13, 4294967168 }
  0x4b   : > { %183 = sfence }
  0x4c   : > { %v202_v0 = vld [vmem:[%s178_s21] ss:$4 sm:$0x3]  ;;  %v656_v1 = vld [vmem:[%s178_s21 + $0x1] ss:$4 sm:$0x3]  ;;  %v216_v2 = vlaneseq }
  0x4d   : > { %v205_v3 = vadd.f32 %v656_v1, %v202_v0  ;;  %v657_v4 = vld [vmem:[%s178_s21 + $0x2] ss:$4 sm:$0x3]  ;;  %v658_v5 = vld [vmem:[%s178_s21 + $0x3] ss:$4 sm:$0x3]  ;;  %v206_v8 = vmax.f32 %v202_v0, %v656_v1 }
  0x4e   : > { %v1031_v6 = vshrl.u32 %v216_v2, 7  ;;  %s661_s19 = sld [smem:[#allocation3 + $0x1]]  ;;  %s870_s12 = smov 127   ;;  %v1088_v43 = vand.u32 127, %v216_v2  ;;  %vm336_vm0 = vcmask 1039360   ;;  %vm265_vm1 = vcmask 7168  }
  0x4f   : > { %v209_v7 = vadd.f32 %v657_v4, %v205_v3  ;;  %v210_v13 = vmax.f32 %v206_v8, %v657_v4  ;;  %s662_s24 = sld [smem:[#allocation3 + $0x4]]  ;;  %s871_s18 = smov 1   ;;  %vm488_vm6 = vcmask 130048   ;;  %vm503_vm8 = vcmask 916480  }
  0x50   : > { %v1034_v10 = vsub.s32 0, %v1031_v6  ;;  %v1037_v11 = vsub.s32 1, %v1031_v6  ;;  %s663_s22 = sld [smem:[#allocation3 + $0x7]]  ;;  %v1099_v44 = vadd.s32 128, %v1088_v43  ;;  %v223_v45 = vand.u32 15, %v1088_v43  ;;  %p1271_p9 = scmp.ne.s32.totalorder %s1257_s6, 0 }
  0x51   : > { %v213_v9 = vadd.f32 %v658_v5, %v209_v7  ;;  %v214_v16 = vmax.f32 %v210_v13, %v658_v5  ;;  %s671_s23 = sld [smem:[#allocation3 + $0xd]]  ;;  %vm247_vm7 = vcmp.ge.s32.totalorder %v1088_v43, 16  ;;  %vm545_vm10 = vcmp.lt.s32.totalorder %v216_v2, 256 }
  0x52   : > { %s670_s26 = sld [smem:[#allocation3 + $0xa]]  ;;  %v230_v46 = vand.u32 15, %v1099_v44  ;;  %vm1111_vm2 = vcmp.le.s32.totalorder %v223_v45, 14  ;;  %vm1119_vm4 = vcmp.ge.s32.totalorder %v223_v45, 1  ;;  %vm250_vm9 = vcmp.lt.s32.totalorder %v1099_v44, 240 }
  0x53   : > { %v215_v12 = vmul.f32 0.25, %v213_v9  ;;  %v373_v17 = vrot.slane %v214_v16, %v1034_v10  ;;  %v366_v18 = vrot.slane %v214_v16, %v1037_v11  ;;  %s672_s27 = sld [smem:[#allocation3 + $0x10]]  ;;  %v874_v44 = vmov 1966171168  }
  0x54   : > { %v285_v19 = vstv %s661_s19  ;;  %s1079_s28 = sld [smem:[#allocation3 + $0x2]]  ;;  %vm1115_vm3 = vcmp.le.s32.totalorder %v230_v46, 14  ;;  %vm1123_vm5 = vcmp.ge.s32.totalorder %v230_v46, 1 }
  0x55   : > { %v262_v14 = vrot.slane %v215_v12, %v1034_v10  ;;  %v255_v15 = vrot.slane %v215_v12, %v1037_v11  ;;  %v1043_v20 = vmul.f32 %v285_v19, %v215_v12  ;;  %v301_v21 = vstv %s662_s24  ;;  %s1081_s29 = sld [smem:[#allocation3 + $0x5]] }
  0x56   : > { %v1045_v22 = vmul.f32 %v301_v21, %v215_v12  ;;  %v317_v23 = vstv %s663_s22  ;;  %s1083_s30 = sld [smem:[#allocation3 + $0x8]] }
  0x57   : > { %332 = vrot.lane.b32.xlu1 %v262_v14, %s870_s12  ;;  %256 = vrot.lane.b32.xlu0 %v255_v15, %s871_s18  ;;  %v291_v24 = vrot.slane %v1043_v20, %v1034_v10  ;;  %v295_v25 = vrot.slane %v1043_v20, %v1037_v11  ;;  %v1051_v26 = vmul.f32 %v317_v23, %v215_v12  ;;  %v417_v31 = vstv %s671_s23  ;;  %s1085_s4 = sld [smem:[#allocation3]]  ;;  %s655_s23 = sshll.u32 %s1022_s10, 1 }
  0x58   : > { %v307_v27 = vrot.slane %v1045_v22, %v1034_v10  ;;  %v311_v28 = vrot.slane %v1045_v22, %v1037_v11  ;;  %v1061_v32 = vmul.f32 %v417_v31, %v214_v16  ;;  %v401_v35 = vstv %s670_s26  ;;  %s1090_s7 = sld [smem:[#allocation3 + $0x3]]  ;;  %s684_s26 = sshll.u32 %s920_s1, 5 }
  0x59   : > { %v323_v29 = vrot.slane %v1051_v26, %v1034_v10  ;;  %v327_v30 = vrot.slane %v1051_v26, %v1037_v11  ;;  %v1067_v36 = vmul.f32 %v401_v35, %v214_v16  ;;  %v433_v37 = vstv %s672_s27  ;;  %s1092_s8 = sld [smem:[#allocation3 + $0x6]]  ;;  %s201_s27 = scalar_lea.vmem [#allocation8], %s655_s23 }
  0x5a   : > { %v423_v33 = vrot.slane %v1061_v32, %v1034_v10  ;;  %v427_v34 = vrot.slane %v1061_v32, %v1037_v11  ;;  %v1069_v38 = vmul.f32 %v433_v37, %v214_v16  ;;  %s1094_s9 = sld [smem:[#allocation3 + $0x9]]  ;;  %v345_v53 = vstv %s1079_s28  ;;  %s563_s28 = sshll.u32 %s201_s27, 4  ;;  %s564_s28 = int_to_ptr.vmem [resolvable:$true] %s563_s28 }
  0x5b   : > { %334 = vrot.lane.b32.xlu1 %v255_v15, %s870_s12  ;;  %263 = vrot.lane.b32.xlu0 %v262_v14, %s871_s18  ;;  %v411_v39 = vrot.slane %v1067_v36, %v1037_v11  ;;  %v407_v40 = vrot.slane %v1067_v36, %v1034_v10  ;;  %s1096_s11 = sld [smem:[#allocation3 + $0xc]]  ;;  %v351_v54 = vstv %s1081_s29 }
  0x5c   : > { %v439_v41 = vrot.slane %v1069_v38, %v1034_v10  ;;  %v443_v42 = vrot.slane %v1069_v38, %v1037_v11  ;;  %s1101_s13 = sld [smem:[#allocation3 + $0xf]]  ;;  %v357_v55 = vstv %s1083_s30 }
  0x5d   : > { %s1103_s21 = sld [smem:[#allocation3 + $0xb]]  ;;  %v273_v56 = vstv %s1085_s4  ;;  %s561_s4 = scalar_lea.hbm %s1246_s3, %s684_s26 }
  0x5e   : > { %s1105_s19 = sld [smem:[#allocation3 + $0xe]]  ;;  %v277_v57 = vstv %s1090_s7  ;;  %s549_s7 = scalar_lea.sflag [#allocation5], %s1022_s10 }
  0x5f   : > { %374 = vrot.lane.b32.xlu1 %v373_v17, %s871_s18  ;;  %367 = vrot.lane.b32.xlu0 %v366_v18, %s871_s18  ;;  %s1107_s24 = sld [smem:[#allocation3 + $0x11]]  ;;  %v281_v58 = vstv %s1092_s8  ;;  %s873_s18 = smov 112  }
  0x60   : > { %v383_v59 = vstv %s1094_s9  ;;  %s477_s22 = sld [smem:[#allocation2]]  ;;  %s798_s8 = scalar_lea.vmem %s564_s28, 32 }
  0x61   : > { %v389_v60 = vstv %s1096_s11  ;;  %p799_p8 = scmp.ne.s32.totalorder %s564_s28, %s798_s8  ;;  %s875_s9 = smov [#allocation8]  }
  0x62   : > { %v395_v63 = vstv %s1101_s13  ;;  %s802_s1 = sshll.u32 %s875_s9, 4  ;;  %s803_s1 = int_to_ptr.vmem [resolvable:$false] %s802_s1 }
  0x63   : > { %450 = vrot.lane.b32.xlu1 %v366_v18, %s870_s12  ;;  %448 = vrot.lane.b32.xlu0 %v373_v17, %s870_s12  ;;  %v460_v0 = vstv %s1103_s21  ;;  %s872_s12 = smov 16   ;;  %p800_p11 = pnand %p799_p8, %p1271_p9 }
  0x64   : > { %v466_v1 = vstv %s1105_s19  ;;  %s804_s11 = scalar_lea.vmem %s803_s1, 64  ;;  %p805_p2 = scmp.lt.s32.totalorder %s564_s28, %s803_s1 }
  0x65   : > { %v472_v3 = vstv %s1107_s24  ;;  %p801_p13 = pneg %p800_p11  ;;  %p806_p1 = scmp.lt.s32.totalorder %s804_s11, %s798_s8 }
  0x66   : > { %v478_v38 = vstv %s477_s22 }
  0x67   : > { %p807_p0 = por %p806_p1, %p805_p2 }
  0x69   : > { %p808_p3 = pnand %p807_p0, %p801_p13 }
  0xc9   : > { %v333_v47 = vpop.permute.xlu1 %332  ;;  %v257_v48 = vpop.permute.xlu0 %256 }
  0xcd   : > { %v335_v61 = vpop.permute.xlu1 %334  ;;  %v264_v62 = vpop.permute.xlu0 %263 }
  0xce   : > { %v337_v4 = vsel %vm336_vm0, %v333_v47, %v335_v61  ;;  %v341_v5 = vsel %vm336_vm0, %v335_v61, %v333_v47  ;;  %v266_v7 = vsel %vm265_vm1, %v264_v62, %v257_v48  ;;  %v269_v8 = vsel %vm265_vm1, %v257_v48, %v264_v62 }
  0xcf   : > { %v342_v9 = vsel %vm1111_vm2, %v337_v4, 0.0  ;;  %v343_v12 = vsel %vm1115_vm3, %v341_v5, 0.0  ;;  %v270_v13 = vsel %vm1119_vm4, %v269_v8, 0.0  ;;  %v271_v14 = vsel %vm1123_vm5, %v266_v7, 0.0 }
  0xd0   : > { %v346_v15 = vmul.f32 %v345_v53, %v342_v9  ;;  %v347_v16 = vmul.f32 %v345_v53, %v343_v12  ;;  %v352_v17 = vmul.f32 %v351_v54, %v342_v9  ;;  %v353_v18 = vmul.f32 %v351_v54, %v343_v12 }
  0xd1   : > { %v358_v19 = vmul.f32 %v357_v55, %v342_v9  ;;  %v359_v21 = vmul.f32 %v357_v55, %v343_v12  ;;  %v274_v23 = vmul.f32 %v273_v56, %v270_v13  ;;  %v275_v31 = vmul.f32 %v273_v56, %v271_v14  ;;  %v375_v35 = vpop.permute.xlu1 %374  ;;  %v368_v37 = vpop.permute.xlu0 %367 }
  0xd2   : > { %v278_v45 = vmul.f32 %v277_v57, %v270_v13  ;;  %v279_v46 = vmul.f32 %v277_v57, %v271_v14  ;;  %v282_v47 = vmul.f32 %v281_v58, %v270_v13  ;;  %v283_v48 = vmul.f32 %v281_v58, %v271_v14 }
  0xd3   : > { %v298_v61 = vadd.f32 %v291_v24, %v274_v23  ;;  %v299_v53 = vadd.f32 %v295_v25, %v275_v31  ;;  %v376_v54 = vsel %vm265_vm1, %v375_v35, %v368_v37  ;;  %v379_v55 = vsel %vm265_vm1, %v368_v37, %v375_v35 }
  0xd4   : > { %v314_v56 = vadd.f32 %v307_v27, %v278_v45  ;;  %v315_v57 = vadd.f32 %v311_v28, %v279_v46  ;;  %v330_v24 = vadd.f32 %v323_v29, %v282_v47  ;;  %v331_v20 = vadd.f32 %v327_v30, %v283_v48 }
  0xd5   : > { %v348_v25 = vadd.f32 %v346_v15, %v298_v61  ;;  %v349_v58 = vadd.f32 %v347_v16, %v299_v53  ;;  %v380_v62 = vsel %vm1119_vm4, %v379_v55, 0.0  ;;  %v381_v27 = vsel %vm1123_vm5, %v376_v54, 0.0  ;;  %v451_v4 = vpop.permute.xlu1 %450  ;;  %v449_v5 = vpop.permute.xlu0 %448 }
  0xd6   : > { %v354_v22 = vadd.f32 %v352_v17, %v314_v56  ;;  %v355_v28 = vadd.f32 %v353_v18, %v315_v57  ;;  %v360_v7 = vadd.f32 %v358_v19, %v330_v24  ;;  %v361_v8 = vadd.f32 %v359_v21, %v331_v20 }
  0xd7   : > { %v384_v9 = vmul.f32 %v383_v59, %v380_v62  ;;  %v385_v29 = vmul.f32 %v383_v59, %v381_v27  ;;  %v390_v12 = vmul.f32 %v389_v60, %v380_v62  ;;  %v391_v13 = vmul.f32 %v389_v60, %v381_v27 }
  0xd8   : > { %v396_v26 = vmul.f32 %v395_v63, %v380_v62  ;;  %v397_v30 = vmul.f32 %v395_v63, %v381_v27  ;;  %v452_v14 = vsel %vm336_vm0, %v449_v5, %v451_v4  ;;  %v456_v51 = vsel %vm336_vm0, %v451_v4, %v449_v5 }
  0xd9   : > { %v386_v15 = vadd.f32 %v384_v9, %v348_v25  ;;  %v387_v16 = vadd.f32 %v385_v29, %v349_v58  ;;  %v392_v52 = vadd.f32 %v390_v12, %v354_v22  ;;  %v393_v23 = vadd.f32 %v391_v13, %v355_v28 }
  0xda   : > { %v398_v31 = vadd.f32 %v396_v26, %v360_v7  ;;  %v399_v17 = vadd.f32 %v397_v30, %v361_v8  ;;  %v457_v18 = vsel %vm1111_vm2, %v452_v14, 0.0  ;;  %v458_v59 = vsel %vm1115_vm3, %v456_v51, 0.0 }
  0xdb   : > { %v430_v60 = vadd.f32 %v423_v33, %v392_v52  ;;  %v461_v63 = vmul.f32 %v460_v0, %v457_v18  ;;  %v462_v19 = vmul.f32 %v460_v0, %v458_v59  ;;  %v467_v21 = vmul.f32 %v466_v1, %v457_v18 }
  0xdc   : > { %v468_v35 = vmul.f32 %v466_v1, %v458_v59  ;;  %v415_v37 = vadd.f32 %v411_v39, %v387_v16  ;;  %v414_v49 = vadd.f32 %v407_v40, %v386_v15  ;;  %v446_v50 = vadd.f32 %v439_v41, %v398_v31 }
  0xdd   : > { %v469_v45 = vadd.f32 %v467_v21, %v430_v60  ;;  %v447_v33 = vadd.f32 %v443_v42, %v399_v17  ;;  %v473_v0 = vmul.f32 %v472_v3, %v457_v18  ;;  %v431_v39 = vadd.f32 %v427_v34, %v393_v23 }
  0xde   : > { %v464_v1 = vadd.f32 %v462_v19, %v415_v37  ;;  %v474_v46 = vmul.f32 %v472_v3, %v458_v59  ;;  %v463_v47 = vadd.f32 %v461_v63, %v414_v49  ;;  %v529_v22 = vunpack.c.l.s4 %v874_v44 }
  0xdf   : > { %v470_v36 = vadd.f32 %v468_v35, %v431_v39  ;;  %v475_v10 = vadd.f32 %v473_v0, %v446_v50  ;;  %v479_v32 = vadd.f32 %v478_v38, %v469_v45 }
  0xe0   : > { %482 = vrot.lane.b32.xlu0 %v464_v1, %s872_s12  ;;  %486 = vrot.lane.b32.xlu1 %v463_v47, %s872_s12  ;;  %v476_v40 = vadd.f32 %v474_v46, %v447_v33  ;;  %v530_v28 = vunpack.c.0.s8 %v529_v22 }
  0xe1   : > { %v480_v48 = vadd.f32 %v478_v38, %v470_v36 }
  0xe2   : > { %v533_v8 = vsub.s32 %v530_v28, %v1031_v6 }
  0xe4   : > { %499 = vrot.lane.b32.xlu0 %v475_v10, %s873_s18  ;;  %501 = vrot.lane.b32.xlu1 %v476_v40, %s873_s18 }
 0x152   : > { %v483_v41 = vpop.permute.xlu0 %482  ;;  %v487_v11 = vpop.permute.xlu1 %486 }
 0x153   : > { %v492_v34 = vsel %vm488_vm6, %v483_v41, %v487_v11  ;;  %v489_v42 = vsel %vm488_vm6, %v487_v11, %v483_v41 }
 0x154   : > { %v493_v3 = vsel %vm247_vm7, %v492_v34, 0.0  ;;  %v496_v55 = vadd.f32 %v489_v42, %v480_v48 }
 0x155   : > { %v495_v61 = vadd.f32 %v493_v3, %v479_v32 }
 0x156   : > { %v500_v53 = vpop.permute.xlu0 %499  ;;  %v502_v54 = vpop.permute.xlu1 %501 }
 0x157   : > { %v504_v56 = vsel %vm503_vm8, %v500_v53, %v502_v54  ;;  %v508_v57 = vsel %vm503_vm8, %v502_v54, %v500_v53 }
 0x158   : > { %v510_v24 = vsel %vm250_vm9, %v508_v57, 0.0  ;;  %v511_v20 = vadd.f32 %v504_v56, %v495_v61 }
 0x159   : > { %v512_v25 = vadd.f32 %v510_v24, %v496_v55 }
 0x15a   : > { %v676_v43 = vmul.f32 -1.442695, %v511_v20 }
 0x15b   : > { %v677_v58 = vmul.f32 -1.442695, %v512_v25 }
 0x15c   : > { %747 = vpow2.f32 %v676_v43 }
 0x15d   : > { %749 = vpow2.f32 %v677_v58 }
 0x169   : > { %v748_v62 = vpop.eup %747 }
 0x16a   : > { %v750_v27 = vpop.eup %749  ;;  %v519_v4 = vadd.f32 1.0, %v748_v62 }
 0x16b   : > { %v520_v5 = vadd.f32 1.0, %v750_v27 }
 0x16c   : > { %751 = vrcp.f32 %v519_v4 }
 0x16d   : > { %753 = vrcp.f32 %v520_v5 }
 0x179   : > { %v752_v7 = vpop.eup %751 }
 0x17a   : > { %v754_v9 = vpop.eup %753 }
 0x17b   : > { %v527_v29 = vcombine.low %v752_v7, %v754_v9 }
 0x17d   : > { %v534_v12 = vrot.slane %v527_v29, %v533_v8 }
 0x17f   : > { %v541_v13 = vrot.slane %v534_v12, %v533_v8 }
 0x181   : > { %547 = vst.msk [vmem:[%s201_s27] sm:$0x3] %vm545_vm10, %v541_v13 }
 0x182   : > { %811 = shalt.err (!%p808_p3)
}
 0x183   : > { %s812_s13 = scalar_lea.hbm %s561_s4, 32  ;;  %s816_s19 = scalar_lea.hbm %s1246_s3, 64 }
 0x184   : > { %p813_p12 = scmp.ne.s32.totalorder %s561_s4, %s812_s13  ;;  %p817_p10 = scmp.lt.s32.totalorder %s561_s4, %s1246_s3 }
 0x185   : > { %p818_p6 = scmp.lt.s32.totalorder %s816_s19, %s812_s13 }
 0x186   : > { %p814_p5 = pnand %p813_p12, %p1271_p9 }
 0x187   : > { %p819_p4 = por %p818_p6, %p817_p10 }
 0x188   : > { %p815_p7 = pneg %p814_p5 }
 0x18a   : > { %p820_p8 = pnand %p819_p4, %p815_p7 }
 0x18c   : > { %823 = shalt.err (!%p820_p8)
}
 0x18d   : > { %691 = dma.vmem_to_hbm [thread:$0]  (%p1271_p9), %s564_s28, 32, %s561_s4, %s549_s7  }
 0x18e PF: > { %s575_s18 = sand.u32 1, %s854_s14   ;;  %p1272_p11 = scmp.ne.s32.totalorder %s1252_s20, 0 }
 0x18f   : > { %p1273_p13 = scmp.ge.s32.totalorder %s866_s17, 2  ;;  %s576_s22 = scalar_lea.sflag [#allocation5], %s575_s18 }
 0x191   : > { %p702_p2 = pnand %p1273_p13, %p1272_p11 }
 0x193   : > { %p703_p1 = pneg %p702_p2 }
 0x195   : > { %849 = dma.done.wait (%p703_p1), %s576_s22, 32  }
 0x196   : > { %851 = vsyncadd (%p703_p1), %s576_s22, 4294967264  ;;  %p18_p0 = scmp.ge.s32.totalorder %s950_s25, 4   ;;  %s1274_s14 = smov %s858_s15 }
 0x197   : > { %s1275_s15 = smov %s862_s16  ;;  %s1276_s16 = smov %s974_s5 }
 0x198   : > { %s1277_s17 = smov %s950_s25  ;;  %20 = sbr.rel (!%p18_p0) target bundleno = 8 (0x8), region = 85 }
 0x19d   :  { %581 = vsyncpa [#allocation4], 1 }
 0x19e   :  { %583 = vsyncpa [#allocation4 + $0x1], 1 }
 0x19f   :  { %584 = vsyncpa [#allocation5], 1 }
 0x1a0   :  { %586 = vsyncpa [#allocation5 + $0x1], 1 }
 0x1a1   :  { %587 = vsyncpa [#allocation6], 1 }
 0x1a2   :  { %589 = vsyncpa [#allocation6 + $0x1], 1 }

</bundles_post_ra>
